<compile_context>
chip_gen: v5e
topology: v5e:2x2
jax: 0.10.0
libtpu: 0.0.40
codegen_flags: <defaults>
</compile_context>

<pallas_src>
import functools

import jax
import jax.numpy as jnp
from jax.experimental import pallas as pl
from jax.experimental.pallas import tpu as pltpu

MP_SUM = "sum"
MP_MEAN = "mean"


def _round_up(v, m):
    return (v + m - 1) // m * m


def _pick_tiles(n_pad, row_cap=256, red_cap=512):
    """Reduction tile as large as possible (fills the 256-wide v6e/v7x MXU
    contraction, amortises grid-step overhead); row tile such that the
    parallel grid axis keeps >= 2 tiles whenever possible (v7x megacore)."""
    red_divs = [t for t in range(128, min(n_pad, red_cap) + 1, 128)
                if n_pad % t == 0]
    t_k = red_divs[-1]
    row_divs = [t for t in range(128, min(n_pad, row_cap) + 1, 128)
                if n_pad % t == 0]
    multi = [t for t in row_divs if n_pad // t >= 2]
    t_r = multi[-1] if multi else row_divs[-1]
    return t_r, t_k


def _mp_kernel(xk_ref, xi_ref, adj_ref, w1_ref, w2_ref, b1_ref, b2_ref,
               out_ref, acc_ref, node_ref, deg_ref, *, mean, agg_bf16):
    k = pl.program_id(1)                    # adjacency reduction step (last axis)
    k_last = pl.num_programs(1) - 1

    @pl.when(k == 0)
    def _init():
        acc_ref[...] = jnp.zeros_like(acc_ref)
        deg_ref[...] = jnp.zeros_like(deg_ref)
        # fc1 of this output row tile: computed exactly once per row tile.
        node_ref[...] = (jnp.dot(xi_ref[...], w1_ref[...],
                                 preferred_element_type=jnp.float32)
                         + b1_ref[...])

    adj_f = adj_ref[...].astype(jnp.float32)          # int8 {0,1} -> f32, exact

    # Steady state: fc2 half only (b2 folded into finalize via the degree).
    x_nbrs = jnp.dot(xk_ref[...], w2_ref[...], preferred_element_type=jnp.float32)

    if agg_bf16:
        # Full-rate bf16 MXU path (adjacency 0/1 is exact in bf16; x_nbrs
        # rounding is ~2^-9 relative).
        acc_ref[...] += jnp.dot(adj_f.astype(jnp.bfloat16),
                                x_nbrs.astype(jnp.bfloat16),
                                preferred_element_type=jnp.float32)
    else:
        acc_ref[...] += jnp.dot(adj_f, x_nbrs, preferred_element_type=jnp.float32)

    # Row-degree partial sums (XLU slot): needed for deg*b2 (sum mode) and for
    # the mean normalisation.
    deg_ref[...] += jnp.sum(adj_f, axis=-1, keepdims=True)

    @pl.when(k == k_last)
    def _finalize():
        acc = acc_ref[...]
        deg = deg_ref[...]
        if mean:
            # Guard isolated / padded zero-degree rows (the torch reference
            # would produce NaN/inf there).
            deg_safe = jnp.where(deg > 0.0, deg, 1.0)
            if agg_bf16:
                m = acc * pl.reciprocal(deg_safe, approx=True) + b2_ref[...]
            else:
                m = acc / deg_safe + b2_ref[...]
        else:
            m = acc + deg * b2_ref[...]
        out_ref[...] = (node_ref[...] + m).astype(out_ref.dtype)


def message_passing(x, adj, w1, b1, w2, b2, neighbor_aggr=MP_SUM, *,
                    row_tile=None, red_tile=None,
                    adj_storage_dtype=jnp.int8,
                    aggregate_in_bf16=False,
                    adj_buffer_count=None,
                    out_dtype=jnp.float32):
    """x: [N, D_in], adj: [N, N] (0/1, no self loops), W stored [D_in, D_out]
    (transposed vs nn.Linear.weight).

    adj_storage_dtype=int8 is exact for binary adjacency and minimises the
    dominant HBM stream; pass jnp.float32 / jnp.bfloat16 for weighted adjacency.
    """
    assert neighbor_aggr in (MP_SUM, MP_MEAN), "wrong aggregation mode"
    n, d_in = x.shape
    d_out = w1.shape[1]
    assert adj.shape == (n, n)
    assert w2.shape == (d_in, d_out) and b1.shape == (d_out,) and b2.shape == (d_out,)

    # --- pad feature dim to a lane-dense multiple of 128 ----------------------
    d_pad = _round_up(max(d_out, 1), 128)
    dp = d_pad - d_out
    w1p = jnp.pad(w1.astype(jnp.float32), ((0, 0), (0, dp)))
    w2p = jnp.pad(w2.astype(jnp.float32), ((0, 0), (0, dp)))
    b1p = jnp.pad(b1.astype(jnp.float32).reshape(1, d_out), ((0, 0), (0, dp)))
    b2p = jnp.pad(b2.astype(jnp.float32).reshape(1, d_out), ((0, 0), (0, dp)))

    # --- pad node dim to a multiple of 128 (zero rows/cols are inert) ---------
    n_pad = _round_up(n, 128)
    n_extra = n_pad - n
    x_p = jnp.pad(x.astype(jnp.float32), ((0, n_extra), (0, 0)))
    adj_p = jnp.pad(adj, ((0, n_extra), (0, n_extra))).astype(adj_storage_dtype)

    # --- tiling ----------------------------------------------------------------
    t_r, t_k = _pick_tiles(n_pad)
    if row_tile is not None:
        t_r = row_tile
    if red_tile is not None:
        t_k = red_tile
    assert n_pad % t_r == 0 and n_pad % t_k == 0
    grid = (n_pad // t_r, n_pad // t_k)               # reduction axis last
    n_row_tiles = grid[0]

    mean = neighbor_aggr == MP_MEAN
    kernel = functools.partial(_mp_kernel, mean=mean, agg_bf16=aggregate_in_bf16)

    # --- VMEM budget (re-derived for the 64 MiB v7x ceiling) -------------------
    adj_item = jnp.dtype(adj_storage_dtype).itemsize
    out_item = jnp.dtype(out_dtype).itemsize
    n_adj_bufs = 2 if adj_buffer_count is None else adj_buffer_count
    vmem_needed = (n_adj_bufs * t_r * t_k * adj_item            # adj stream
                   + 2 * t_k * d_in * 4 + 2 * t_r * d_in * 4    # x_k, x_i streams
                   + 2 * 2 * d_in * d_pad * 4                   # W1, W2
                   + 2 * 2 * 8 * d_pad * 4                      # biases (padded)
                   + 2 * t_r * d_pad * out_item                 # output stream
                   + 2 * t_r * d_pad * 4                        # acc + node scratch
                   + t_r * 128 * 4)                             # deg (lane-padded)
    vmem_limit = int(min(64 << 20, 2 * vmem_needed + (16 << 20)))

    # --- advisory cost estimate (consistent with actual in-kernel work) --------
    flops = (2 * n_pad * d_in * d_pad * n_row_tiles   # fc2 recomputed per row tile
             + 2 * n_pad * d_in * d_pad               # fc1 (once per row tile total)
             + 2 * n_pad * n_pad * d_pad              # adj @ fc2(x)
             + 4 * n_pad * d_pad)                     # finalize adds
    bytes_accessed = (adj_p.size * adj_item
                      + (n_row_tiles + 1) * x_p.size * 4
                      + (w1p.size + w2p.size + b1p.size + b2p.size) * 4
                      + n_pad * d_pad * out_item)
    transcendentals = n_pad if mean else 0

    if adj_buffer_count is None:
        adj_spec = pl.BlockSpec((t_r, t_k), lambda i, k: (i, k))
    else:  # deeper pipelining on the dominant (adjacency) stream
        adj_spec = pl.BlockSpec((t_r, t_k), lambda i, k: (i, k),
                                pipeline_mode=pl.Buffered(adj_buffer_count))

    out_pad = pl.pallas_call(
        kernel,
        out_shape=jax.ShapeDtypeStruct((n_pad, d_pad), out_dtype),
        grid_spec=pltpu.PrefetchScalarGridSpec(
            num_scalar_prefetch=0,
            grid=grid,
            in_specs=[
                pl.BlockSpec((t_k, d_in), lambda i, k: (k, 0)),    # x (k-tile, fc2)
                pl.BlockSpec((t_r, d_in), lambda i, k: (i, 0)),    # x (i-tile, fc1)
                adj_spec,                                          # adjacency tile
                pl.BlockSpec((d_in, d_pad), lambda i, k: (0, 0)),  # W1
                pl.BlockSpec((d_in, d_pad), lambda i, k: (0, 0)),  # W2
                pl.BlockSpec((1, d_pad), lambda i, k: (0, 0)),     # b1
                pl.BlockSpec((1, d_pad), lambda i, k: (0, 0)),     # b2
            ],
            out_specs=pl.BlockSpec((t_r, d_pad), lambda i, k: (i, 0)),
            scratch_shapes=[
                pltpu.VMEM((t_r, d_pad), jnp.float32),   # acc = sum_k adj_ik @ (x_k W2)
                pltpu.VMEM((t_r, d_pad), jnp.float32),   # node = x_i W1 + b1
                pltpu.VMEM((t_r, 1), jnp.float32),       # deg row sums
            ],
        ),
        compiler_params=pltpu.CompilerParams(
            dimension_semantics=("parallel", "arbitrary"),
            vmem_limit_bytes=vmem_limit),
        cost_estimate=pl.CostEstimate(flops=flops,
                                      transcendentals=transcendentals,
                                      bytes_accessed=bytes_accessed),
    )(x_p, x_p, adj_p, w1p, w2p, b1p, b2p)

    out = out_pad
    if n_extra:
        out = out[:n]
    if dp:
        out = out[:, :d_out]
    return out


def _reference(x, adj, w1, b1, w2, b2, neighbor_aggr):
    x_node = x @ w1 + b1
    x_nbrs = x @ w2 + b2
    m = adj @ x_nbrs
    if neighbor_aggr == MP_SUM:
        return x_node + m
    deg = adj @ jnp.ones((x.shape[0], 1), x.dtype)
    return x_node + m / deg


if __name__ == "__main__":
    # N and D_OUT deliberately not multiples of 128 to exercise the padding path.
    N, D_IN, D_OUT = 200, 32, 48

    key = jax.random.PRNGKey(0)
    kx, kadj, kw1, kb1, kw2, kb2 = jax.random.split(key, 6)

    # node features
    x = jax.random.normal(kx, (N, D_IN), dtype=jnp.float32)

    # random symmetric 0/1 adjacency, no self loops, every node has >= 2 neighbours
    a = (jax.random.uniform(kadj, (N, N)) < 0.08).astype(jnp.float32)
    adj = jnp.clip(a + a.T, 0.0, 1.0)
    ring = (jnp.eye(N, k=1) + jnp.eye(N, k=-1)
            + jnp.eye(N, k=N - 1) + jnp.eye(N, k=-(N - 1))).astype(jnp.float32)
    adj = jnp.clip(adj + ring, 0.0, 1.0)
    adj = adj * (1.0 - jnp.eye(N, dtype=jnp.float32))   # zero diagonal

    # deterministic nn.Linear-style init: U(-1/sqrt(in), 1/sqrt(in))
    bound = 1.0 / jnp.sqrt(jnp.float32(D_IN))
    w1 = jax.random.uniform(kw1, (D_IN, D_OUT), minval=-bound, maxval=bound, dtype=jnp.float32)
    b1 = jax.random.uniform(kb1, (D_OUT,), minval=-bound, maxval=bound, dtype=jnp.float32)
    w2 = jax.random.uniform(kw2, (D_IN, D_OUT), minval=-bound, maxval=bound, dtype=jnp.float32)
    b2 = jax.random.uniform(kb2, (D_OUT,), minval=-bound, maxval=bound, dtype=jnp.float32)

    ok = True
    for mode in (MP_SUM, MP_MEAN):
        ref = _reference(x, adj, w1, b1, w2, b2, mode)

        # exact f32 path (default): strict parity with the reference
        out = jax.block_until_ready(
            message_passing(x, adj, w1, b1, w2, b2, neighbor_aggr=mode))
        ok = ok and bool(jnp.allclose(out, ref, atol=1e-4, rtol=1e-4))

        # fast bf16-aggregation path (full MXU rate on v5e/v6e/v7x): operand
        # rounding is ~2^-9 relative, so compare with a looser tolerance.
        out_fast = jax.block_until_ready(
            message_passing(x, adj, w1, b1, w2, b2, neighbor_aggr=mode,
                            aggregate_in_bf16=True))
        ok = ok and bool(jnp.allclose(out_fast, ref, atol=1e-1, rtol=5e-2))

    print("KERNEL_OK" if ok else "KERNEL_MISMATCH")
</pallas_src>

<mosaic_0001>
module attributes {stable_mosaic.version = 11 : i64} {
  func.func @_mp_kernel(%arg0: i32, %arg1: i32, %arg2: memref<256x32xf32, #tpu.memory_space<vmem>>, %arg3: memref<128x32xf32, #tpu.memory_space<vmem>>, %arg4: memref<128x256xi8, #tpu.memory_space<vmem>>, %arg5: memref<32x128xf32, #tpu.memory_space<vmem>>, %arg6: memref<32x128xf32, #tpu.memory_space<vmem>>, %arg7: memref<1x128xf32, #tpu.memory_space<vmem>>, %arg8: memref<1x128xf32, #tpu.memory_space<vmem>>, %arg9: memref<128x128xf32, #tpu.memory_space<vmem>>, %arg10: memref<128x128xf32, #tpu.memory_space<vmem>>, %arg11: memref<128x128xf32, #tpu.memory_space<vmem>>, %arg12: memref<128x1xf32, #tpu.memory_space<vmem>>) attributes {dimension_semantics = [#tpu.dimension_semantics<parallel>, #tpu.dimension_semantics<arbitrary>], iteration_bounds = array<i64: 2, 1>, scalar_prefetch = 0 : i64, scratch_operands = 3 : i64, tpu.core_type = #tpu.core_type<tc>, window_params = [{transform_indices = @transform_0, window_bounds = array<i64: 256, 32>}, {transform_indices = @transform_1, window_bounds = array<i64: 128, 32>}, {transform_indices = @transform_2, window_bounds = array<i64: 128, 256>}, {pipeline_mode = #tpu.pipeline_mode<synchronous>, transform_indices = @transform_3, window_bounds = array<i64: 32, 128>}, {pipeline_mode = #tpu.pipeline_mode<synchronous>, transform_indices = @transform_4, window_bounds = array<i64: 32, 128>}, {pipeline_mode = #tpu.pipeline_mode<synchronous>, transform_indices = @transform_5, window_bounds = array<i64: 1, 128>}, {pipeline_mode = #tpu.pipeline_mode<synchronous>, transform_indices = @transform_6, window_bounds = array<i64: 1, 128>}, {transform_indices = @transform_7, window_bounds = array<i64: 128, 128>}]} {
    %c0_i32 = arith.constant 0 : i32
    %0 = arith.cmpi eq, %arg1, %c0_i32 : i32
    %1 = arith.extui %0 : i1 to i32
    %c0_i32_0 = arith.constant 0 : i32
    %2 = arith.cmpi ne, %1, %c0_i32_0 : i32
    scf.if %2 {
      %cst_18 = arith.constant 0.000000e+00 : f32
      %20 = vector.broadcast %cst_18 : f32 to vector<128x128xf32>
      %c0_19 = arith.constant 0 : index
      %c0_20 = arith.constant 0 : index
      %21 = vector.load %arg10[%c0_19, %c0_20] : memref<128x128xf32, #tpu.memory_space<vmem>>, vector<128x128xf32>
      tpu.vector_store %arg10[%c0_19, %c0_20], %20 {strides = array<i32>} : memref<128x128xf32, #tpu.memory_space<vmem>>, vector<128x128xf32>,
      %cst_21 = arith.constant 0.000000e+00 : f32
      %22 = vector.broadcast %cst_21 : f32 to vector<128x1xf32>
      %c0_22 = arith.constant 0 : index
      %c0_23 = arith.constant 0 : index
      %23 = vector.load %arg12[%c0_22, %c0_23] : memref<128x1xf32, #tpu.memory_space<vmem>>, vector<128x1xf32>
      tpu.vector_store %arg12[%c0_22, %c0_23], %22 {strides = array<i32>} : memref<128x1xf32, #tpu.memory_space<vmem>>, vector<128x1xf32>,
      %c0_24 = arith.constant 0 : index
      %c0_25 = arith.constant 0 : index
      %24 = vector.load %arg3[%c0_24, %c0_25] : memref<128x32xf32, #tpu.memory_space<vmem>>, vector<128x32xf32>
      %c0_26 = arith.constant 0 : index
      %c0_27 = arith.constant 0 : index
      %25 = vector.load %arg5[%c0_26, %c0_27] : memref<32x128xf32, #tpu.memory_space<vmem>>, vector<32x128xf32>
      %cst_28 = arith.constant dense<0.000000e+00> : vector<128x128xf32>
      %26 = tpu.matmul %24, %25, %cst_28 {dimension_numbers = #tpu.dot_dimension_numbers<[1], [0], [0], [1], [0, 0, 1, 1], [], []>} : vector<128x32xf32>, vector<32x128xf32>, vector<128x128xf32> -> vector<128x128xf32>
      %c0_29 = arith.constant 0 : index
      %c0_30 = arith.constant 0 : index
      %27 = vector.load %arg7[%c0_29, %c0_30] : memref<1x128xf32, #tpu.memory_space<vmem>>, vector<1x128xf32>
      %28 = vector.broadcast %27 : vector<1x128xf32> to vector<128x128xf32>
      %29 = arith.addf %26, %28 : vector<128x128xf32>
      %c0_31 = arith.constant 0 : index
      %c0_32 = arith.constant 0 : index
      %30 = vector.load %arg11[%c0_31, %c0_32] : memref<128x128xf32, #tpu.memory_space<vmem>>, vector<128x128xf32>
      tpu.vector_store %arg11[%c0_31, %c0_32], %29 {strides = array<i32>} : memref<128x128xf32, #tpu.memory_space<vmem>>, vector<128x128xf32>,
    } else {
    }
    %c0 = arith.constant 0 : index
    %c0_1 = arith.constant 0 : index
    %3 = vector.load %arg4[%c0, %c0_1] : memref<128x256xi8, #tpu.memory_space<vmem>>, vector<128x256xi8>
    %4 = arith.sitofp %3 : vector<128x256xi8> to vector<128x256xf32>
    %c0_2 = arith.constant 0 : index
    %c0_3 = arith.constant 0 : index
    %5 = vector.load %arg2[%c0_2, %c0_3] : memref<256x32xf32, #tpu.memory_space<vmem>>, vector<256x32xf32>
    %c0_4 = arith.constant 0 : index
    %c0_5 = arith.constant 0 : index
    %6 = vector.load %arg6[%c0_4, %c0_5] : memref<32x128xf32, #tpu.memory_space<vmem>>, vector<32x128xf32>
    %cst = arith.constant dense<0.000000e+00> : vector<256x128xf32>
    %7 = tpu.matmul %5, %6, %cst {dimension_numbers = #tpu.dot_dimension_numbers<[1], [0], [0], [1], [0, 0, 1, 1], [], []>} : vector<256x32xf32>, vector<32x128xf32>, vector<256x128xf32> -> vector<256x128xf32>
    %c0_6 = arith.constant 0 : index
    %c0_7 = arith.constant 0 : index
    %8 = vector.load %arg10[%c0_6, %c0_7] : memref<128x128xf32, #tpu.memory_space<vmem>>, vector<128x128xf32>
    %cst_8 = arith.constant dense<0.000000e+00> : vector<128x128xf32>
    %9 = tpu.matmul %4, %7, %cst_8 {dimension_numbers = #tpu.dot_dimension_numbers<[1], [0], [0], [1], [0, 0, 1, 1], [], []>} : vector<128x256xf32>, vector<256x128xf32>, vector<128x128xf32> -> vector<128x128xf32>
    %10 = arith.addf %8, %9 : vector<128x128xf32>
    %c0_9 = arith.constant 0 : index
    %c0_10 = arith.constant 0 : index
    %11 = vector.load %arg10[%c0_9, %c0_10] : memref<128x128xf32, #tpu.memory_space<vmem>>, vector<128x128xf32>
    tpu.vector_store %arg10[%c0_9, %c0_10], %10 {strides = array<i32>} : memref<128x128xf32, #tpu.memory_space<vmem>>, vector<128x128xf32>,
    %c0_11 = arith.constant 0 : index
    %c0_12 = arith.constant 0 : index
    %12 = vector.load %arg12[%c0_11, %c0_12] : memref<128x1xf32, #tpu.memory_space<vmem>>, vector<128x1xf32>
    %cst_13 = arith.constant dense<0.000000e+00> : vector<128xf32>
    %13 = vector.multi_reduction <add>, %4, %cst_13 [1] : vector<128x256xf32> to vector<128xf32>
    %14 = vector.shape_cast %13 : vector<128xf32> to vector<128x1xf32>
    %15 = arith.addf %12, %14 : vector<128x1xf32>
    %c0_14 = arith.constant 0 : index
    %c0_15 = arith.constant 0 : index
    %16 = vector.load %arg12[%c0_14, %c0_15] : memref<128x1xf32, #tpu.memory_space<vmem>>, vector<128x1xf32>
    tpu.vector_store %arg12[%c0_14, %c0_15], %15 {strides = array<i32>} : memref<128x1xf32, #tpu.memory_space<vmem>>, vector<128x1xf32>,
    %c0_i32_16 = arith.constant 0 : i32
    %17 = arith.cmpi eq, %arg1, %c0_i32_16 : i32
    %18 = arith.extui %17 : i1 to i32
    %c0_i32_17 = arith.constant 0 : i32
    %19 = arith.cmpi ne, %18, %c0_i32_17 : i32
    scf.if %19 {
      %c0_18 = arith.constant 0 : index
      %c0_19 = arith.constant 0 : index
      %20 = vector.load %arg10[%c0_18, %c0_19] : memref<128x128xf32, #tpu.memory_space<vmem>>, vector<128x128xf32>
      %c0_20 = arith.constant 0 : index
      %c0_21 = arith.constant 0 : index
      %21 = vector.load %arg12[%c0_20, %c0_21] : memref<128x1xf32, #tpu.memory_space<vmem>>, vector<128x1xf32>
      %c0_22 = arith.constant 0 : index
      %c0_23 = arith.constant 0 : index
      %22 = vector.load %arg8[%c0_22, %c0_23] : memref<1x128xf32, #tpu.memory_space<vmem>>, vector<1x128xf32>
      %23 = vector.broadcast %21 : vector<128x1xf32> to vector<128x128xf32>
      %24 = vector.broadcast %22 : vector<1x128xf32> to vector<128x128xf32>
      %25 = arith.mulf %23, %24 : vector<128x128xf32>
      %26 = arith.addf %20, %25 : vector<128x128xf32>
      %c0_24 = arith.constant 0 : index
      %c0_25 = arith.constant 0 : index
      %27 = vector.load %arg11[%c0_24, %c0_25] : memref<128x128xf32, #tpu.memory_space<vmem>>, vector<128x128xf32>
      %28 = arith.addf %27, %26 : vector<128x128xf32>
      %c0_26 = arith.constant 0 : index
      %c0_27 = arith.constant 0 : index
      %29 = vector.load %arg9[%c0_26, %c0_27] : memref<128x128xf32, #tpu.memory_space<vmem>>, vector<128x128xf32>
      tpu.vector_store %arg9[%c0_26, %c0_27], %28 {strides = array<i32>} : memref<128x128xf32, #tpu.memory_space<vmem>>, vector<128x128xf32>,
    } else {
    }
    return
  }
  func.func @transform_0(%arg0: i32, %arg1: i32) -> (i32, i32) {
    %c0_i32 = arith.constant 0 : i32
    %c0_i32_0 = arith.constant 0 : i32
    return %arg1, %c0_i32 : i32, i32
  }
  func.func @transform_1(%arg0: i32, %arg1: i32) -> (i32, i32) {
    %c0_i32 = arith.constant 0 : i32
    %c0_i32_0 = arith.constant 0 : i32
    return %arg0, %c0_i32 : i32, i32
  }
  func.func @transform_2(%arg0: i32, %arg1: i32) -> (i32, i32) {
    %c0_i32 = arith.constant 0 : i32
    return %arg0, %arg1 : i32, i32
  }
  func.func @transform_3(%arg0: i32, %arg1: i32) -> (i32, i32) {
    %c0_i32 = arith.constant 0 : i32
    %c0_i32_0 = arith.constant 0 : i32
    %c0_i32_1 = arith.constant 0 : i32
    return %c0_i32, %c0_i32_0 : i32, i32
  }
  func.func @transform_4(%arg0: i32, %arg1: i32) -> (i32, i32) {
    %c0_i32 = arith.constant 0 : i32
    %c0_i32_0 = arith.constant 0 : i32
    %c0_i32_1 = arith.constant 0 : i32
    return %c0_i32, %c0_i32_0 : i32, i32
  }
  func.func @transform_5(%arg0: i32, %arg1: i32) -> (i32, i32) {
    %c0_i32 = arith.constant 0 : i32
    %c0_i32_0 = arith.constant 0 : i32
    %c0_i32_1 = arith.constant 0 : i32
    return %c0_i32, %c0_i32_0 : i32, i32
  }
  func.func @transform_6(%arg0: i32, %arg1: i32) -> (i32, i32) {
    %c0_i32 = arith.constant 0 : i32
    %c0_i32_0 = arith.constant 0 : i32
    %c0_i32_1 = arith.constant 0 : i32
    return %c0_i32, %c0_i32_0 : i32, i32
  }
  func.func @transform_7(%arg0: i32, %arg1: i32) -> (i32, i32) {
    %c0_i32 = arith.constant 0 : i32
    %c0_i32_0 = arith.constant 0 : i32
    return %arg0, %c0_i32 : i32, i32
  }
}

</mosaic_0001>

<bundles_post_ra>
// kernel: tpu_custom_call.1
= control target key start
LH: loop header
LB: loop body
LE: loop exit
PB: predicated region body
PF: predicated region fallthrough
CT: control target
= control target key end

     0   :  { %12 = vsyncpa [#allocation6], 0  ;;  %s2355_s0 = inlined_call_operand.vmem [shape: f32[256,32], index: 0, kind: input, shape index: {}]   ;;  %s2356_s1 = inlined_call_operand.vmem [shape: f32[256,32], index: 1, kind: input, shape index: {}]   ;;  %s2357_s2 = inlined_call_operand.vmem [shape: s8[256,256], index: 2, kind: input, shape index: {}]   ;;  %s2358_s3 = inlined_call_operand.vmem [shape: f32[32,128], index: 3, kind: input, shape index: {}]   ;;  %s2359_s4 = inlined_call_operand.vmem [shape: f32[32,128], index: 4, kind: input, shape index: {}]   ;;  %s2360_s5 = inlined_call_operand.vmem [shape: f32[1,128], index: 5, kind: input, shape index: {}]   ;;  %s2361_s6 = inlined_call_operand.vmem [shape: f32[1,128], index: 6, kind: input, shape index: {}]   ;;  %s2362_s7 = inlined_call_operand.hbm [shape: f32[256,128], index: 7, kind: output, shape index: {}]  }
   0x1   :  { %14 = vsyncpa [#allocation6 + $0x1], 0  ;;  %s1720_s24 = smov 0   ;;  %s1722_s25 = smov 0  }
   0x2   :  { %s1724_s26 = smov 0   ;;  %s1726_s27 = smov 0  }
   0x3   :  { %s1728_s28 = smov 0   ;;  %s1730_s29 = smov 0  }
   0x4 LB: > { %s1457_s30 = sadd.s32 4294967295, %s1674_s29   ;;  %s1458_s8 = sadd.s32 4294967294, %s1674_s29   ;;  %s1674_s29 = sphi %s1730_s29, %s20_s29   ;;  %s1670_s28 = sphi %s1728_s28, %s2397_s28   ;;  %s1666_s27 = sphi %s1726_s27, %s2396_s27   ;;  %s1662_s26 = sphi %s1724_s26, %s2395_s26   ;;  %s1658_s25 = sphi %s1722_s25, %s2394_s25   ;;  %s1654_s24 = sphi %s1720_s24, %s2393_s24  }
   0x5   : > { %s32_s9 = sadd.s32 1, %s1670_s28  ;;  %s203_s10 = sadd.s32 1, %s1662_s26 }
   0x6   : > { %p34_p0 = scmp.ge.s32.totalorder %s32_s9, 2  ;;  %p213_p1 = scmp.ne.s32.totalorder %s1662_s26, %s1658_s25 }
   0x7   : > { %p214_p2 = scmp.eq.s32.totalorder %s1457_s30, 1  ;;  %p219_p3 = scmp.ne.s32.totalorder %s1658_s25, %s1654_s24 }
   0x8   : > { %s2399_s9 = smov (%p34_p0, %s32_s9), 0  ;;  %p220_p5 = scmp.eq.s32.totalorder %s1458_s8, 1 }
   0x9   : > { %p1760_p4 = por %p214_p2, %p213_p1  ;;  %s200_s12 = ssub.s32 %s1670_s28, %s2399_s9 }
   0xa   : > { %p1462_p6 = scmp.ge.s32.totalorder %s1674_s29, 1  ;;  %p201_p7 = scmp.eq.s32.totalorder %s200_s12, 0 }
   0xb   : > { %p1767_p8 = por %p220_p5, %p219_p3  ;;  %p283_p9 = scmp.lt.s32.totalorder %s1674_s29, 3 }
   0xc   : > { %s1773_s14 = scalar_select %p201_p7, %s1662_s26, %s203_s10  }
   0xd   : > { %p284_p10 = pnand %p1462_p6, %p283_p9 }
   0xf   : > { %287 = sbr.rel (%p284_p10) target bundleno = 616 (0x268), region = 48 }
  0x14   : > { %v411_v0 = vld [vmem:[%s2358_s3 + $0x18] sm:$0xff]  ;;  %v410_v2 = vld [vmem:[%s2358_s3 + $0x10] sm:$0xff]  ;;  %s1464_s21 = sshll.u32 %s1666_s27, 4  ;;  %v409_v4 = vld [vmem:[%s2358_s3 + $0x8] sm:$0xff]  ;;  %vm416_vm0 = vcmask 261120   ;;  %vm375_vm1 = vcmask 7168  }
  0x15   : > { %v653_v1 = vld [vmem:[%s2359_s4 + $0x18] sm:$0xff]  ;;  %477 = vmatpush.msra.mxu0 %v411_v0  ;;  %v652_v3 = vld [vmem:[%s2359_s4 + $0x10] sm:$0xff]  ;;  %p337_p11 = scmp.lt.s32.totalorder %s1464_s21, 31  ;;  %v651_v5 = vld [vmem:[%s2359_s4 + $0x8] sm:$0xff]  ;;  %1524 = vmatpush.msra.mxu2 %v411_v0  ;;  %s327_s20 = sand.u32 1, %s1658_s25  }
  0x16   : > { %1528 = vmatpush.msra.mxu1 %v653_v1  ;;  %v408_v6 = vld [vmem:[%s2358_s3] sm:$0xff]  ;;  %v628_v8 = vld [vmem:[%s2355_s0 + $0x50] sm:$0xff]  ;;  %v629_v11 = vld [vmem:[%s2355_s0 + $0x58] sm:$0xff]  ;;  %s1463_s30 = sshll.u32 %s327_s20, 7  ;;  %s1523_s10 = sshll.u32 %s1666_s27, 7 }
  0x17   : > { %478 = vmatpush.msra.mxu0 %v410_v2  ;;  %s2401_s21 = smov (!%p337_p11, %s1464_s21), 31  ;;  %v650_v7 = vld [vmem:[%s2359_s4] sm:$0xff]  ;;  %1525 = vmatpush.msra.mxu2 %v410_v2  ;;  %v631_v15 = vld [vmem:[%s2355_s0 + $0x68] sm:$0xff]  ;;  %v632_v17 = vld [vmem:[%s2355_s0 + $0x70] sm:$0xff]  ;;  %s1350_s16 = scalar_lea.hbm %s2362_s7, %s1523_s10 }
  0x18   : > { %1529 = vmatpush.msra.mxu1 %v652_v3  ;;  %s1465_s19 = sshll.u32 %s2401_s21, 3  ;;  %v630_v13 = vld [vmem:[%s2355_s0 + $0x60] sm:$0xff]  ;;  %v633_v19 = vld [vmem:[%s2355_s0 + $0x78] sm:$0xff]  ;;  %v635_v23 = vld [vmem:[%s2355_s0 + $0x88] sm:$0xff]  ;;  %s1466_s21 = sshll.u32 %s1666_s27, 2 }
  0x19   : > { %479 = vmatpush.msra.mxu0 %v409_v4  ;;  %s1806_s8 = scalar_lea.vmem %s2356_s1, %s1465_s19  ;;  %1526 = vmatpush.msra.mxu2 %v409_v4  ;;  %v634_v21 = vld [vmem:[%s2355_s0 + $0x80] sm:$0xff]  ;;  %v636_v25 = vld [vmem:[%s2355_s0 + $0x90] sm:$0xff]  ;;  %v637_v27 = vld [vmem:[%s2355_s0 + $0x98] sm:$0xff]  ;;  %p344_p12 = scmp.lt.s32.totalorder %s1466_s21, 7 }
  0x1a   : > { %1530 = vmatpush.msra.mxu1 %v651_v5  ;;  %v392_v9 = vld [vmem:[%s1806_s8] sm:$0xff]  ;;  %v393_v10 = vld [vmem:[%s1806_s8 + $0x8] sm:$0xff]  ;;  %v394_v12 = vld [vmem:[%s1806_s8 + $0x10] sm:$0xff]  ;;  %s1339_s27 = scalar_lea.sflag [#allocation6], %s327_s20 }
  0x1b   : > { %480 = vmatpush.msra.mxu0 %v408_v6  ;;  %1527 = vmatpush.msra.mxu2 %v408_v6  ;;  %v395_v14 = vld [vmem:[%s1806_s8 + $0x18] sm:$0xff]  ;;  %v396_v16 = vld [vmem:[%s1806_s8 + $0x20] sm:$0xff]  ;;  %v397_v18 = vld [vmem:[%s1806_s8 + $0x28] sm:$0xff]  ;;  %s2403_s21 = smov (!%p344_p12, %s1466_s21), 7 }
  0x1c   : > { %1531 = vmatpush.msra.mxu1 %v650_v7  ;;  %1469 = vmatmul.msk.f32.vlgmr.msra.gmra.mxu0 %vm416_vm0, %v392_v9  ;;  %v398_v20 = vld [vmem:[%s1806_s8 + $0x30] sm:$0xff]  ;;  %v399_v22 = vld [vmem:[%s1806_s8 + $0x38] sm:$0xff]  ;;  %v400_v24 = vld [vmem:[%s1806_s8 + $0x40] sm:$0xff]  ;;  %s1522_s15 = sshll.u32 %s2403_s21, 4  ;;  %s2253_s21 = scalar_lea.vmem [#allocation5], %s1463_s30 }
  0x1d   : > { %1495 = vmatmul.msk.f32.vlgmr.msra.gmra.mxu1 %vm416_vm0, %v628_v8  ;;  %763 = vmatpush.msrb.mxu0 %v653_v1  ;;  %v401_v26 = vld [vmem:[%s1806_s8 + $0x48] sm:$0xff]  ;;  %v402_v28 = vld [vmem:[%s1806_s8 + $0x50] sm:$0xff]  ;;  %v638_v29 = vld [vmem:[%s2355_s0 + $0xa0] sm:$0xff]  ;;  %s1975_s18 = scalar_lea.vmem %s2357_s2, %s1522_s15  ;;  %s1351_s17 = sshll.u32 %s2253_s21, 4  ;;  %s1352_s17 = int_to_ptr.vmem [resolvable:$true] %s1351_s17 }
  0x1e   : > { %v618_v30 = vld [vmem:[%s2355_s0] sm:$0xff]  ;;  %v639_v31 = vld [vmem:[%s2355_s0 + $0xa8] sm:$0xff]  ;;  %v640_v33 = vld [vmem:[%s2355_s0 + $0xb0] sm:$0xff]  ;;  %s1616_s30 = scalar_lea.hbm %s2362_s7, 256 }
  0x1f   : > { %764 = vmatpush.msrb.mxu0 %v652_v3  ;;  %v619_v32 = vld [vmem:[%s2355_s0 + $0x8] sm:$0xff]  ;;  %v620_v34 = vld [vmem:[%s2355_s0 + $0x10] sm:$0xff]  ;;  %v641_v35 = vld [vmem:[%s2355_s0 + $0xb8] sm:$0xff] }
  0x20   : > { %v621_v36 = vld [vmem:[%s2355_s0 + $0x18] sm:$0xff]  ;;  %v642_v37 = vld [vmem:[%s2355_s0 + $0xc0] sm:$0xff]  ;;  %v643_v39 = vld [vmem:[%s2355_s0 + $0xc8] sm:$0xff] }
  0x21   : > { %765 = vmatpush.msrb.mxu0 %v651_v5  ;;  %v622_v38 = vld [vmem:[%s2355_s0 + $0x20] sm:$0xff]  ;;  %v623_v42 = vld [vmem:[%s2355_s0 + $0x28] sm:$0xff]  ;;  %v644_v43 = vld [vmem:[%s2355_s0 + $0xd0] sm:$0xff] }
  0x22   : > { %v624_v46 = vld [vmem:[%s2355_s0 + $0x30] sm:$0xff]  ;;  %v645_v47 = vld [vmem:[%s2355_s0 + $0xd8] sm:$0xff]  ;;  %v646_v51 = vld [vmem:[%s2355_s0 + $0xe0] sm:$0xff] }
  0x23   : > { %766 = vmatpush.msrb.mxu0 %v650_v7  ;;  %v625_v50 = vld [vmem:[%s2355_s0 + $0x38] sm:$0xff]  ;;  %v626_v54 = vld [vmem:[%s2355_s0 + $0x40] sm:$0xff]  ;;  %v647_v55 = vld [vmem:[%s2355_s0 + $0xe8] sm:$0xff] }
  0x24   : > { %1470 = vmatmul.msk.f32.gmra.mxu0 %vm416_vm0, %v393_v10  ;;  %v627_v58 = vld [vmem:[%s2355_s0 + $0x48] sm:$0xff]  ;;  %v648_v59 = vld [vmem:[%s2355_s0 + $0xf0] sm:$0xff]  ;;  %v649_v62 = vld [vmem:[%s2355_s0 + $0xf8] sm:$0xff] }
  0x25   : > { %1496 = vmatmul.msk.f32.gmra.mxu1 %vm416_vm0, %v629_v11  ;;  %v546_v1 = vld [vmem:[%s1975_s18] sm:$0xff]  ;;  %v547_v2 = vld [vmem:[%s1975_s18 + $0x8] sm:$0xff] }
  0x26   : > { %v554_v3 = vunpack.c.0.s8 %v546_v1  ;;  %v555_v4 = vunpack.c.0.s8 %v547_v2 }
  0x28   : > { %v1979_v5 = vcvt.s32.f32 %v554_v3  ;;  %v1981_v6 = vcvt.s32.f32 %v555_v4 }
  0x2a   : > { %v1058_v9 = vadd.f32 %v1981_v6, %v1979_v5 }
  0x2c   : > { %1471 = vmatmul.msk.f32.gmra.mxu0 %vm416_vm0, %v394_v12  ;;  %1059 = vadd.xlane.f32.xlu0 %v1058_v9  ;;  %v558_v12 = vunpack.c.2.s8 %v546_v1 }
  0x2d   : > { %1497 = vmatmul.msk.f32.gmra.mxu1 %vm416_vm0, %v630_v13  ;;  %v559_v13 = vunpack.c.2.s8 %v547_v2 }
  0x34   : > { %1472 = vmatmul.msk.f32.gmra.mxu0 %vm416_vm0, %v395_v14  ;;  %v1993_v14 = vcvt.s32.f32 %v558_v12 }
  0x35   : > { %1498 = vmatmul.msk.f32.gmra.mxu1 %vm416_vm0, %v631_v15  ;;  %v1995_v15 = vcvt.s32.f32 %v559_v13 }
  0x3c   : > { %1473 = vmatmul.msk.f32.gmra.mxu0 %vm416_vm0, %v396_v16 }
  0x3d   : > { %1499 = vmatmul.msk.f32.gmra.mxu1 %vm416_vm0, %v632_v17 }
  0x44   : > { %1474 = vmatmul.msk.f32.gmra.mxu0 %vm416_vm0, %v397_v18  ;;  %v1064_v18 = vadd.f32 %v1995_v15, %v1993_v14 }
  0x45   : > { %1500 = vmatmul.msk.f32.gmra.mxu1 %vm416_vm0, %v633_v19 }
  0x46   : > { %1065 = vadd.xlane.f32.xlu1 %v1064_v18  ;;  %v403_v18 = vld [vmem:[%s1806_s8 + $0x58] sm:$0xff] }
  0x47   : > { %1480 = vmatmul.msk.f32.vlgmr.msra.gmra.mxu2 %vm416_vm0, %v403_v18 }
  0x4c   : > { %1475 = vmatmul.msk.f32.gmra.mxu0 %vm416_vm0, %v398_v20 }
  0x4d   : > { %1501 = vmatmul.msk.f32.gmra.mxu1 %vm416_vm0, %v634_v21  ;;  %v2008_v21 = vld [vmem:[%s1975_s18 + $0x10] sm:$0xff] }
  0x4e   : > { %v568_v18 = vunpack.c.3.s8 %v2008_v21 }
  0x54   : > { %1476 = vmatmul.msk.f32.gmra.mxu0 %vm416_vm0, %v399_v22  ;;  %v2011_v22 = vld [vmem:[%s1975_s18 + $0x18] sm:$0xff] }
  0x55   : > { %1502 = vmatmul.msk.f32.gmra.mxu1 %vm416_vm0, %v635_v23  ;;  %v562_v23 = vunpack.c.0.s8 %v2008_v21 }
  0x5c   : > { %1477 = vmatmul.msk.f32.gmra.mxu0 %vm416_vm0, %v400_v24  ;;  %v563_v24 = vunpack.c.0.s8 %v2011_v22 }
  0x5d   : > { %1503 = vmatmul.msk.f32.gmra.mxu1 %vm416_vm0, %v636_v25  ;;  %v556_v25 = vunpack.c.1.s8 %v546_v1 }
  0x64   : > { %1478 = vmatmul.msk.f32.gmra.mxu0 %vm416_vm0, %v401_v26  ;;  %v557_v26 = vunpack.c.1.s8 %v547_v2 }
  0x65   : > { %1504 = vmatmul.msk.f32.gmra.mxu1 %vm416_vm0, %v637_v27  ;;  %v2015_v27 = vcvt.s32.f32 %v562_v23 }
  0x6c   : > { %1479 = vmatmul.msk.f32.gmra.mxu0 %vm416_vm0, %v402_v28  ;;  %v2017_v28 = vcvt.s32.f32 %v563_v24 }
  0x6d   : > { %1505 = vmatmul.msk.f32.gmra.mxu1 %vm416_vm0, %v638_v29  ;;  %v2019_v29 = vcvt.s32.f32 %v556_v25 }
  0x74   : > { %1485 = vmatmul.msk.f32.vlgmr.msrb.gmra.mxu0 %vm416_vm0, %v618_v30  ;;  %v2021_v30 = vcvt.s32.f32 %v557_v26 }
  0x75   : > { %1506 = vmatmul.msk.f32.gmra.mxu1 %vm416_vm0, %v639_v31 }
  0x7c   : > { %1486 = vmatmul.msk.f32.gmra.mxu0 %vm416_vm0, %v619_v32 }
  0x7d   : > { %1507 = vmatmul.msk.f32.gmra.mxu1 %vm416_vm0, %v640_v33  ;;  %v1070_v33 = vadd.f32 %v2017_v28, %v2015_v27 }
  0x7f   : > { %1071 = vadd.xlane.f32.xlu2 %v1070_v33 }
  0x84   : > { %1487 = vmatmul.msk.f32.gmra.mxu0 %vm416_vm0, %v620_v34  ;;  %v1061_v34 = vadd.f32 %v2021_v30, %v2019_v29 }
  0x85   : > { %1508 = vmatmul.msk.f32.gmra.mxu1 %vm416_vm0, %v641_v35 }
  0x86   : > { %1062 = vadd.xlane.f32.xlu0 %v1061_v34 }
  0x8c   : > { %1488 = vmatmul.msk.f32.gmra.mxu0 %vm416_vm0, %v621_v36 }
  0x8d   : > { %1509 = vmatmul.msk.f32.gmra.mxu1 %vm416_vm0, %v642_v37  ;;  %v560_v37 = vunpack.c.3.s8 %v546_v1  ;;  %v551_v1 = vld [vmem:[%s1975_s18 + $0x28] sm:$0xff] }
  0x8e   : > { %v571_v3 = vunpack.c.0.s8 %v551_v1  ;;  %v577_v25 = vunpack.c.3.s8 %v551_v1  ;;  %v573_v33 = vunpack.c.1.s8 %v551_v1 }
  0x90   : > { %v2069_v9 = vcvt.s32.f32 %v571_v3 }
  0x94   : > { %1489 = vmatmul.msk.f32.gmra.mxu0 %vm416_vm0, %v622_v38  ;;  %v561_v38 = vunpack.c.3.s8 %v547_v2 }
  0x95   : > { %1510 = vmatmul.msk.f32.gmra.mxu1 %vm416_vm0, %v643_v39  ;;  %v566_v39 = vunpack.c.2.s8 %v2008_v21 }
  0x99   : > { %v1911_v40 = vpop.f32.mrf.mxu0 }
  0x9a   : > { %2367 = vst [vmem:[#allocation8_spill] sm:$0xff] %v1911_v40  ;;  %v798_v41 = vpop.f32.mrf.mxu1 }
  0x9c   : > { %1490 = vmatmul.msk.f32.gmra.mxu0 %vm416_vm0, %v623_v42  ;;  %v2037_v42 = vcvt.s32.f32 %v560_v37  ;;  %v2081_v37 = vcvt.s32.f32 %v577_v25 }
  0x9d   : > { %1511 = vmatmul.msk.f32.gmra.mxu1 %vm416_vm0, %v644_v43  ;;  %v2039_v43 = vcvt.s32.f32 %v561_v38 }
  0xa1   : > { %v1921_v44 = vpop.f32.mrf.mxu0 }
  0xa2   : > { %2368 = vst [vmem:[#allocation9_spill] sm:$0xff] %v1921_v44  ;;  %v801_v45 = vpop.f32.mrf.mxu1 }
  0xa4   : > { %1491 = vmatmul.msk.f32.gmra.mxu0 %vm416_vm0, %v624_v46 }
  0xa5   : > { %1512 = vmatmul.msk.f32.gmra.mxu1 %vm416_vm0, %v645_v47 }
  0xa9   : > { %v1931_v48 = vpop.f32.mrf.mxu0 }
  0xaa   : > { %2369 = vst [vmem:[#allocation10_spill] sm:$0xff] %v1931_v48  ;;  %v804_v49 = vpop.f32.mrf.mxu1 }
  0xac   : > { %1492 = vmatmul.msk.f32.gmra.mxu0 %vm416_vm0, %v625_v50  ;;  %v1067_v50 = vadd.f32 %v2039_v43, %v2037_v42 }
  0xad   : > { %1513 = vmatmul.msk.f32.gmra.mxu1 %vm416_vm0, %v646_v51 }
  0xae   : > { %1068 = vadd.xlane.f32.xlu1 %v1067_v50 }
  0xb1   : > { %v1941_v52 = vpop.f32.mrf.mxu0 }
  0xb2   : > { %2370 = vst [vmem:[#allocation11_spill] sm:$0xff] %v1941_v52  ;;  %v807_v53 = vpop.f32.mrf.mxu1 }
  0xb4   : > { %1493 = vmatmul.msk.f32.gmra.mxu0 %vm416_vm0, %v626_v54  ;;  %v565_v54 = vunpack.c.1.s8 %v2011_v22 }
  0xb5   : > { %1514 = vmatmul.msk.f32.gmra.mxu1 %vm416_vm0, %v647_v55 }
  0xb9   : > { %v1951_v56 = vpop.f32.mrf.mxu0 }
  0xba   : > { %2371 = vst [vmem:[#allocation12_spill] sm:$0xff] %v1951_v56  ;;  %v810_v57 = vpop.f32.mrf.mxu1 }
  0xbc   : > { %1494 = vmatmul.msk.f32.gmra.mxu0 %vm416_vm0, %v627_v58 }
  0xbd   : > { %1515 = vmatmul.msk.f32.gmra.mxu1 %vm416_vm0, %v648_v59 }
  0xc1   : > { %v1962_v60 = vpop.f32.mrf.mxu0 }
  0xc2   : > { %2372 = vst [vmem:[#allocation13_spill] sm:$0xff] %v1962_v60  ;;  %v813_v61 = vpop.f32.mrf.mxu1  ;;  %v575_v60 = vunpack.c.2.s8 %v551_v1 }
  0xc3   : > { %880 = vmatpush.msrb.mxu2 %v813_v61 }
  0xc5   : > { %1516 = vmatmul.msk.f32.gmra.mxu1 %vm416_vm0, %v649_v62  ;;  %881 = vmatpush.msrb.mxu2 %v810_v57  ;;  %v2057_v57 = vcvt.s32.f32 %v565_v54  ;;  %v550_v62 = vld [vmem:[%s1975_s18 + $0x20] sm:$0xff]  ;;  %v552_v54 = vld [vmem:[%s1975_s18 + $0x30] sm:$0xff] }
  0xc6   : > { %v570_v2 = vunpack.c.0.s8 %v550_v62  ;;  %v576_v24 = vunpack.c.3.s8 %v550_v62  ;;  %v572_v26 = vunpack.c.1.s8 %v550_v62  ;;  %v584_v56 = vunpack.c.3.s8 %v552_v54 }
  0xc7   : > { %882 = vmatpush.msrb.mxu2 %v807_v53  ;;  %v564_v53 = vunpack.c.1.s8 %v2008_v21 }
  0xc8   : > { %v2067_v4 = vcvt.s32.f32 %v570_v2  ;;  %v2079_v34 = vcvt.s32.f32 %v576_v24  ;;  %v2083_v38 = vcvt.s32.f32 %v572_v26  ;;  %v582_v2 = vunpack.c.2.s8 %v552_v54  ;;  %v404_v24 = vld [vmem:[%s1806_s8 + $0x60] sm:$0xff] }
  0xc9   : > { %883 = vmatpush.msrb.mxu2 %v804_v49  ;;  %v1968_v63 = vpop.f32.mrf.mxu0  ;;  %v2055_v55 = vcvt.s32.f32 %v564_v53  ;;  %v2130_v48 = vcvt.s32.f32 %v584_v56 }
  0xca   : > { %2373 = vst [vmem:[#allocation14_spill] sm:$0xff] %v1968_v63  ;;  %v1970_v0 = vpop.f32.mrf.mxu1  ;;  %v1082_v23 = vadd.f32 %v2069_v9, %v2067_v4  ;;  %v2100_v25 = vcvt.s32.f32 %v582_v2  ;;  %1481 = vmatmul.msk.f32.gmra.mxu2 %vm416_vm0, %v404_v24  ;;  %v578_v2 = vunpack.c.0.s8 %v552_v54  ;;  %v574_v63 = vunpack.c.2.s8 %v550_v62 }
  0xcb   : > { %884 = vmatpush.msrb.mxu2 %v801_v45  ;;  %v2041_v45 = vcvt.s32.f32 %v566_v39  ;;  %v1073_v61 = vadd.f32 %v2057_v57, %v2055_v55  ;;  %v2085_v39 = vcvt.s32.f32 %v573_v33  ;;  %v2104_v33 = vcvt.s32.f32 %v568_v18  ;;  %v405_v18 = vld [vmem:[%s1806_s8 + $0x68] sm:$0xff] }
  0xcd   : > { %885 = vmatpush.msrb.mxu2 %v798_v41  ;;  %v567_v41 = vunpack.c.2.s8 %v2011_v22  ;;  %1074 = vadd.xlane.f32.xlu2 %v1073_v61  ;;  %v1085_v53 = vadd.f32 %v2085_v39, %v2083_v38  ;;  %v553_v61 = vld [vmem:[%s1975_s18 + $0x38] sm:$0xff]  ;;  %s1353_s18 = sshll.u32 %s1350_s16, 4  ;;  %s1354_s18 = int_to_ptr.hbm [resolvable:$true] %s1353_s18 }
  0xce   : > { %v583_v3 = vunpack.c.2.s8 %v553_v61  ;;  %v585_v52 = vunpack.c.3.s8 %v553_v61  ;;  %v581_v62 = vunpack.c.1.s8 %v553_v61 }
  0xcf   : > { %v2043_v46 = vcvt.s32.f32 %v567_v41 }
  0xd0   : > { %v2102_v26 = vcvt.s32.f32 %v583_v3  ;;  %v579_v3 = vunpack.c.0.s8 %v553_v61 }
  0xd1   : > { %v1983_v7 = vpop.f32.mrf.mxu0  ;;  %v1076_v51 = vadd.f32 %v2043_v46, %v2041_v45 }
  0xd2   : > { %2374 = vst [vmem:[#allocation15_spill] sm:$0xff] %v1983_v7  ;;  %v1985_v8 = vpop.f32.mrf.mxu1  ;;  %v1100_v21 = vadd.f32 %v2102_v26, %v2100_v25  ;;  %1482 = vmatmul.msk.f32.gmra.mxu2 %vm416_vm0, %v405_v18  ;;  %v2132_v18 = vcvt.s32.f32 %v585_v52  ;;  %v407_v52 = vld [vmem:[%s1806_s8 + $0x78] sm:$0xff] }
  0xd3   : > { %1077 = vadd.xlane.f32.xlu0 %v1076_v51  ;;  %v1091_v51 = vadd.f32 %v2081_v37, %v2079_v34  ;;  %2378 = vst [vmem:[#allocation19_spill] sm:$0xff] %v2102_v26 }
  0xd5   : > { %1083 = vadd.xlane.f32.xlu2 %v1082_v23  ;;  %v569_v23 = vunpack.c.3.s8 %v2011_v22 }
  0xd9   : > { %v1989_v10 = vpop.f32.mrf.mxu0 }
  0xda   : > { %2375 = vst [vmem:[#allocation16_spill] sm:$0xff] %v1989_v10  ;;  %v1991_v11 = vpop.f32.mrf.mxu1 }
  0xdb   : > { %1086 = vadd.xlane.f32.xlu0 %v1085_v53 }
  0xdd   : > { %1092 = vadd.xlane.f32.xlu2 %v1091_v51 }
  0xe1   : > { %v1997_v16 = vpop.f32.mrf.mxu0 }
  0xe2   : > { %2376 = vst [vmem:[#allocation17_spill] sm:$0xff] %v1997_v16  ;;  %v1999_v17 = vpop.f32.mrf.mxu1  ;;  %v2116_v16 = vcvt.s32.f32 %v578_v2 }
  0xe5   : > { %1101 = vadd.xlane.f32.xlu2 %v1100_v21  ;;  %v2123_v21 = vcvt.s32.f32 %v574_v63  ;;  %v580_v63 = vunpack.c.1.s8 %v552_v54  ;;  %v1676_v54 = vmov 0.0  }
  0xe6   : > { %376 = vst.msk [vmem:[#allocation4] sm:$0xff] %vm375_vm1, %v1676_v54 }
  0xe7   : > { %v2137_v1 = vcvt.s32.f32 %v580_v63  ;;  %377 = vst.msk [vmem:[#allocation4 + $0x8] sm:$0xff] %vm375_vm1, %v1676_v54 }
  0xe8   : > { %378 = vst.msk [vmem:[#allocation4 + $0x10] sm:$0xff] %vm375_vm1, %v1676_v54 }
  0xe9   : > { %v2003_v19 = vpop.f32.mrf.mxu0  ;;  %379 = vst.msk [vmem:[#allocation4 + $0x18] sm:$0xff] %vm375_vm1, %v1676_v54 }
  0xea   : > { %2377 = vst [vmem:[#allocation18_spill] sm:$0xff] %v2003_v19  ;;  %v2005_v20 = vpop.f32.mrf.mxu1  ;;  %v2106_v19 = vcvt.s32.f32 %v569_v23  ;;  %v2118_v23 = vcvt.s32.f32 %v579_v3  ;;  %v406_v3 = vld [vmem:[%s1806_s8 + $0x70] sm:$0xff]  ;;  %s1610_s8 = sshra.s32 %s1354_s18, 4  ;;  %s1611_s8 = int_to_ptr.hbm [resolvable:$true] %s1610_s8 }
  0xeb   : > { %1483 = vmatmul.msk.f32.gmra.mxu2 %vm416_vm0, %v406_v3  ;;  %380 = vst.msk [vmem:[#allocation4 + $0x20] sm:$0xff] %vm375_vm1, %v1676_v54  ;;  %s1612_s19 = scalar_lea.hbm %s1611_s8, 128  ;;  %p1617_p2 = scmp.lt.s32.totalorder %s1611_s8, %s2362_s7 }
  0xec   : > { %v1079_v22 = vadd.f32 %v2106_v19, %v2104_v33  ;;  %2379 = vst [vmem:[#allocation20_spill] sm:$0xff] %v2118_v23  ;;  %v1094_v24 = vadd.f32 %v2118_v23, %v2116_v16  ;;  %p1613_p13 = scmp.ne.s32.totalorder %s1611_s8, %s1612_s19  ;;  %p1618_p3 = scmp.lt.s32.totalorder %s1616_s30, %s1612_s19 }
  0xed   : > { %381 = vst.msk [vmem:[#allocation4 + $0x28] sm:$0xff] %vm375_vm1, %v1676_v54 }
  0xee   : > { %1080 = vadd.xlane.f32.xlu1 %v1079_v22  ;;  %1095 = vadd.xlane.f32.xlu0 %v1094_v24  ;;  %v2125_v22 = vcvt.s32.f32 %v575_v60  ;;  %v1103_v60 = vadd.f32 %v2132_v18, %v2130_v48  ;;  %v2139_v24 = vcvt.s32.f32 %v581_v62  ;;  %382 = vst.msk [vmem:[#allocation4 + $0x30] sm:$0xff] %vm375_vm1, %v1676_v54  ;;  %p1614_p0 = pnand %p1613_p13, %p1760_p4  ;;  %p1619_p5 = por %p1618_p3, %p1617_p2 }
  0xef   : > { %383 = vst.msk [vmem:[#allocation4 + $0x38] sm:$0xff] %vm375_vm1, %v1676_v54 }
  0xf0   : > { %v1088_v2 = vadd.f32 %v2125_v22, %v2123_v21  ;;  %v1097_v56 = vadd.f32 %v2139_v24, %v2137_v1  ;;  %384 = vst.msk [vmem:[#allocation4 + $0x40] sm:$0xff] %vm375_vm1, %v1676_v54  ;;  %p1615_p1 = pneg %p1614_p0 }
  0xf1   : > { %v2023_v31 = vpop.f32.mrf.mxu0  ;;  %385 = vst.msk [vmem:[#allocation4 + $0x48] sm:$0xff] %vm375_vm1, %v1676_v54 }
  0xf2   : > { %v2025_v32 = vpop.f32.mrf.mxu1  ;;  %386 = vst.msk [vmem:[#allocation4 + $0x50] sm:$0xff] %vm375_vm1, %v1676_v54  ;;  %p1620_p6 = pnand %p1619_p5, %p1615_p1 }
  0xf3   : > { %1484 = vmatmul.msk.f32.gmra.mxu2 %vm416_vm0, %v407_v52  ;;  %387 = vst.msk [vmem:[#allocation4 + $0x58] sm:$0xff] %vm375_vm1, %v1676_v54 }
  0xf4   : > { %388 = vst.msk [vmem:[#allocation4 + $0x60] sm:$0xff] %vm375_vm1, %v1676_v54 }
  0xf5   : > { %389 = vst.msk [vmem:[#allocation4 + $0x68] sm:$0xff] %vm375_vm1, %v1676_v54 }
  0xf6   : > { %1089 = vadd.xlane.f32.xlu1 %v1088_v2  ;;  %1104 = vadd.xlane.f32.xlu0 %v1103_v60  ;;  %390 = vst.msk [vmem:[#allocation4 + $0x70] sm:$0xff] %vm375_vm1, %v1676_v54 }
  0xf7   : > { %391 = vst.msk [vmem:[#allocation4 + $0x78] sm:$0xff] %vm375_vm1, %v1676_v54 }
  0xf9   : > { %v2031_v35 = vpop.f32.mrf.mxu0 }
  0xfa   : > { %v2033_v36 = vpop.f32.mrf.mxu1 }
  0xfb   : > { %v1054_v52 = vld [vmem:[#allocation4 + $0x60] sm:$0xff] }
  0xfe   : > { %1098 = vadd.xlane.f32.xlu1 %v1097_v56 }
 0x101   : > { %v2045_v47 = vpop.f32.mrf.mxu0 }
 0x102   : > { %v2047_v49 = vpop.f32.mrf.mxu1 }
 0x109   : > { %v2059_v58 = vpop.f32.mrf.mxu0 }
 0x10a   : > { %v2061_v59 = vpop.f32.mrf.mxu1 }
 0x111   : > { %v2071_v12 = vpop.f32.mrf.mxu0 }
 0x112   : > { %v2073_v13 = vpop.f32.mrf.mxu1 }
 0x119   : > { %v2087_v41 = vpop.f32.mrf.mxu0 }
 0x11a   : > { %v2089_v50 = vpop.f32.mrf.mxu1 }
 0x121   : > { %v786_v51 = vpop.f32.mrf.mxu0 }
 0x122   : > { %v2108_v53 = vpop.f32.mrf.mxu1 }
 0x129   : > { %v789_v10 = vpop.f32.mrf.mxu0 }
 0x12a   : > { %v852_v7 = vpop.f32.mrf.mxu1 }
 0x131   : > { %v792_v44 = vpop.f32.mrf.mxu0 }
 0x132   : > { %v855_v40 = vpop.f32.mrf.mxu1 }
 0x139   : > { %v795_v26 = vpop.f32.mrf.mxu0 }
 0x13a   : > { %v858_v23 = vpop.f32.mrf.mxu1  ;;  %886 = vmatpush.msrb.mxu2 %v795_v26  ;;  %v1051_v26 = vld [vmem:[#allocation4 + $0x48] sm:$0xff] }
 0x13c   : > { %887 = vmatpush.msrb.mxu2 %v792_v44  ;;  %v1042_v44 = vld [vmem:[#allocation4] sm:$0xff] }
 0x13e   : > { %888 = vmatpush.msrb.mxu2 %v789_v10  ;;  %v1060_v10 = vpop.xlane.xlu0 %1059 }
 0x140   : > { %889 = vmatpush.msrb.mxu2 %v786_v51 }
 0x142   : > { %v861_v61 = vpop.f32.mrf.mxu1  ;;  %890 = vmatpush.msrb.mxu2 %v2087_v41  ;;  %v1106_v41 = vadd.f32 %v1060_v10, %v1042_v44  ;;  %v1052_v10 = vld [vmem:[#allocation4 + $0x50] sm:$0xff] }
 0x143   : > { %945 = vmatpush.msra.mxu3 %v861_v61 }
 0x144   : > { %891 = vmatpush.msrb.mxu2 %v2071_v12  ;;  %1123 = vst.msk [vmem:[#allocation4] sm:$0xff] %vm375_vm1, %v1106_v41 }
 0x145   : > { %946 = vmatpush.msra.mxu3 %v858_v23 }
 0x146   : > { %892 = vmatpush.msrb.mxu2 %v2059_v58 }
 0x147   : > { %947 = vmatpush.msra.mxu3 %v855_v40  ;;  %v1677_v40 = vmov 0  }
 0x148   : > { %893 = vmatpush.msrb.mxu2 %v2045_v47  ;;  %1591 = vset.pattern.permute.xlu1 %v1677_v40 }
 0x149   : > { %948 = vmatpush.msra.mxu3 %v852_v7  ;;  %1593 = vset.pattern.permute.xlu0 %v1677_v40 }
 0x14a   : > { %894 = vmatpush.msrb.mxu2 %v2031_v35  ;;  %1592 = vset.pattern.permute.xlu2 %v1677_v40 }
 0x14b   : > { %949 = vmatpush.msra.mxu3 %v2108_v53  ;;  %v1158_v7 = vld [vmem:[#allocation4] sm:$0xff] }
 0x14c   : > { %895 = vmatpush.msrb.mxu2 %v2023_v31  ;;  %1177 = vperm.xlu1 %1591, %v1158_v7   ;;  %v1066_v31 = vpop.xlane.xlu1 %1065  ;;  %v1057_v7 = vld [vmem:[#allocation4 + $0x78] sm:$0xff] }
 0x14d   : > { %950 = vmatpush.msra.mxu3 %v2089_v50  ;;  %896 = vmatmul.f32.vlgmr.msrb.gmra.mxu2 %v1979_v5  ;;  %v1044_v5 = vld [vmem:[#allocation4 + $0x10] sm:$0xff] }
 0x14e   : > { %v1108_v35 = vadd.f32 %v1066_v31, %v1044_v5 }
 0x14f   : > { %951 = vmatpush.msra.mxu3 %v2073_v13 }
 0x150   : > { %1125 = vst.msk [vmem:[#allocation4 + $0x10] sm:$0xff] %vm375_vm1, %v1108_v35  ;;  %v1055_v35 = vld [vmem:[#allocation4 + $0x68] sm:$0xff] }
 0x151   : > { %952 = vmatpush.msra.mxu3 %v2061_v59 }
 0x153   : > { %953 = vmatpush.msra.mxu3 %v2047_v49 }
 0x155   : > { %954 = vmatpush.msra.mxu3 %v2033_v36  ;;  %899 = vmatmul.f32.gmra.mxu2 %v2019_v29  ;;  %v1072_v36 = vpop.xlane.xlu2 %1071 }
 0x157   : > { %955 = vmatpush.msra.mxu3 %v2025_v32  ;;  %v1160_v29 = vld [vmem:[#allocation4 + $0x10] sm:$0xff]  ;;  %v1043_v32 = vld [vmem:[#allocation4 + $0x8] sm:$0xff] }
 0x158   : > { %1187 = vperm.xlu0 %1593, %v1160_v29  }
 0x159   : > { %956 = vmatpush.msra.mxu3 %v2005_v20  ;;  %v1046_v20 = vld [vmem:[#allocation4 + $0x20] sm:$0xff] }
 0x15a   : > { %v1110_v47 = vadd.f32 %v1072_v36, %v1046_v20 }
 0x15b   : > { %957 = vmatpush.msra.mxu3 %v1999_v17  ;;  %v1063_v17 = vpop.xlane.xlu0 %1062 }
 0x15c   : > { %v1107_v49 = vadd.f32 %v1063_v17, %v1043_v32  ;;  %1127 = vst.msk [vmem:[#allocation4 + $0x20] sm:$0xff] %vm375_vm1, %v1110_v47 }
 0x15d   : > { %958 = vmatpush.msra.mxu3 %v1991_v11  ;;  %902 = vmatmul.f32.gmra.mxu2 %v1993_v14  ;;  %v1048_v11 = vld [vmem:[#allocation4 + $0x30] sm:$0xff]  ;;  %v1069_v14 = vpop.xlane.xlu1 %1068 }
 0x15e   : > { %1124 = vst.msk [vmem:[#allocation4 + $0x8] sm:$0xff] %vm375_vm1, %v1107_v49  ;;  %v2240_v49 = vld [vmem:[%s2361_s6] ss:$0 sm:$0xff] }
 0x15f   : > { %959 = vmatpush.msra.mxu3 %v1985_v8  ;;  %v1045_v8 = vld [vmem:[#allocation4 + $0x18] sm:$0xff] }
 0x160   : > { %v1109_v58 = vadd.f32 %v1069_v14, %v1045_v8 }
 0x161   : > { %960 = vmatpush.msra.mxu3 %v1970_v0 }
 0x162   : > { %961 = vmatmul.f32.vlgmr.msra.gmra.mxu3 %v1981_v6  ;;  %1126 = vst.msk [vmem:[#allocation4 + $0x18] sm:$0xff] %vm375_vm1, %v1109_v58 }
 0x163   : > { %v1162_v0 = vld [vmem:[#allocation4 + $0x20] sm:$0xff] }
 0x164   : > { %1197 = vperm.xlu1 %1591, %v1162_v0  }
 0x165   : > { %905 = vmatmul.f32.gmra.mxu2 %v2037_v42  ;;  %v1159_v6 = vld [vmem:[#allocation4 + $0x8] sm:$0xff]  ;;  %v1078_v42 = vpop.xlane.xlu0 %1077  ;;  %v1081_v60 = vpop.xlane.xlu1 %1080 }
 0x166   : > { %1182 = vperm.xlu2 %1592, %v1159_v6  }
 0x16a   : > { %964 = vmatmul.f32.gmra.mxu3 %v2021_v30  ;;  %v1112_v30 = vadd.f32 %v1078_v42, %v1048_v11 }
 0x16c   : > { %1129 = vst.msk [vmem:[#allocation4 + $0x30] sm:$0xff] %vm375_vm1, %v1112_v30 }
 0x16d   : > { %908 = vmatmul.f32.gmra.mxu2 %v2015_v27  ;;  %v1075_v27 = vpop.xlane.xlu2 %1074  ;;  %v1087_v51 = vpop.xlane.xlu0 %1086 }
 0x16e   : > { %v1115_v23 = vadd.f32 %v1087_v51, %v1051_v26  ;;  %v1090_v41 = vpop.xlane.xlu1 %1089 }
 0x16f   : > { %v1116_v40 = vadd.f32 %v1090_v41, %v1052_v10  ;;  %v2386_v41 = vld [vmem:[#allocation12_spill] sm:$0xff] }
 0x170   : > { %1132 = vst.msk [vmem:[#allocation4 + $0x48] sm:$0xff] %vm375_vm1, %v1115_v23 }
 0x171   : > { %1133 = vst.msk [vmem:[#allocation4 + $0x50] sm:$0xff] %vm375_vm1, %v1116_v40 }
 0x172   : > { %967 = vmatmul.f32.gmra.mxu3 %v1995_v15  ;;  %v1047_v15 = vld [vmem:[#allocation4 + $0x28] sm:$0xff] }
 0x173   : > { %v1111_v59 = vadd.f32 %v1075_v27, %v1047_v15  ;;  %v1164_v12 = vld [vmem:[#allocation4 + $0x30] sm:$0xff] }
 0x174   : > { %1207 = vperm.xlu1 %1591, %v1164_v12  }
 0x175   : > { %911 = vmatmul.f32.gmra.mxu2 %v2055_v55  ;;  %v1161_v55 = vld [vmem:[#allocation4 + $0x18] sm:$0xff]  ;;  %1128 = vst.msk [vmem:[#allocation4 + $0x28] sm:$0xff] %vm375_vm1, %v1111_v59  ;;  %v1084_v13 = vpop.xlane.xlu2 %1083  ;;  %v1096_v54 = vpop.xlane.xlu0 %1095 }
 0x176   : > { %1192 = vperm.xlu2 %1592, %v1161_v55   ;;  %v1118_v61 = vadd.f32 %v1096_v54, %v1054_v52  ;;  %v1099_v29 = vpop.xlane.xlu1 %1098  ;;  %v2383_v55 = vld [vmem:[#allocation9_spill] sm:$0xff] }
 0x177   : > { %v1119_v20 = vadd.f32 %v1099_v29, %v1055_v35 }
 0x178   : > { %1135 = vst.msk [vmem:[#allocation4 + $0x60] sm:$0xff] %vm375_vm1, %v1118_v61 }
 0x179   : > { %1136 = vst.msk [vmem:[#allocation4 + $0x68] sm:$0xff] %vm375_vm1, %v1119_v20 }
 0x17a   : > { %970 = vmatmul.f32.gmra.mxu3 %v2039_v43  ;;  %v1050_v43 = vld [vmem:[#allocation4 + $0x40] sm:$0xff] }
 0x17b   : > { %v1114_v50 = vadd.f32 %v1084_v13, %v1050_v43 }
 0x17c   : > { %v1163_v2 = vld [vmem:[#allocation4 + $0x28] sm:$0xff] }
 0x17d   : > { %914 = vmatmul.f32.gmra.mxu2 %v2041_v45  ;;  %1131 = vst.msk [vmem:[#allocation4 + $0x40] sm:$0xff] %vm375_vm1, %v1114_v50  ;;  %v1053_v45 = vld [vmem:[#allocation4 + $0x58] sm:$0xff] }
 0x17e   : > { %1202 = vperm.xlu2 %1592, %v1163_v2  }
 0x182   : > { %973 = vmatmul.f32.gmra.mxu3 %v2017_v28  ;;  %v1093_v28 = vpop.xlane.xlu2 %1092 }
 0x183   : > { %v1117_v53 = vadd.f32 %v1093_v28, %v1053_v45 }
 0x184   : > { %v1166_v3 = vld [vmem:[#allocation4 + $0x40] sm:$0xff] }
 0x185   : > { %917 = vmatmul.f32.gmra.mxu2 %v2104_v33  ;;  %1134 = vst.msk [vmem:[#allocation4 + $0x58] sm:$0xff] %vm375_vm1, %v1117_v53  ;;  %1217 = vperm.xlu1 %1591, %v1166_v3   ;;  %v2384_v53 = vld [vmem:[#allocation10_spill] sm:$0xff] }
 0x18a   : > { %976 = vmatmul.f32.gmra.mxu3 %v2057_v57  ;;  %v1056_v57 = vld [vmem:[#allocation4 + $0x70] sm:$0xff]  ;;  %v1102_v33 = vpop.xlane.xlu2 %1101 }
 0x18b   : > { %v1120_v63 = vadd.f32 %v1102_v33, %v1056_v57 }
 0x18c   : > { %v1169_v56 = vld [vmem:[#allocation4 + $0x58] sm:$0xff] }
 0x18d   : > { %920 = vmatmul.f32.gmra.mxu2 %v2067_v4  ;;  %v1049_v4 = vld [vmem:[#allocation4 + $0x38] sm:$0xff]  ;;  %1137 = vst.msk [vmem:[#allocation4 + $0x70] sm:$0xff] %vm375_vm1, %v1120_v63  ;;  %1232 = vperm.xlu1 %1591, %v1169_v56  }
 0x18e   : > { %v1113_v62 = vadd.f32 %v1081_v60, %v1049_v4 }
 0x190   : > { %1130 = vst.msk [vmem:[#allocation4 + $0x38] sm:$0xff] %vm375_vm1, %v1113_v62  ;;  %v2385_v62 = vld [vmem:[#allocation11_spill] sm:$0xff] }
 0x192   : > { %979 = vmatmul.f32.gmra.mxu3 %v2043_v46  ;;  %v1167_v46 = vld [vmem:[#allocation4 + $0x48] sm:$0xff] }
 0x193   : > { %1222 = vperm.xlu0 %1593, %v1167_v46  }
 0x194   : > { %v1172_v44 = vld [vmem:[#allocation4 + $0x70] sm:$0xff] }
 0x195   : > { %923 = vmatmul.f32.gmra.mxu2 %v2083_v38  ;;  %v2210_v38 = vpop.f32.mrf.mxu2  ;;  %1247 = vperm.xlu1 %1591, %v1172_v44  }
 0x19a   : > { %982 = vmatmul.f32.gmra.mxu3 %v2106_v19  ;;  %v1165_v19 = vld [vmem:[#allocation4 + $0x38] sm:$0xff] }
 0x19b   : > { %1212 = vperm.xlu2 %1592, %v1165_v19  }
 0x19d   : > { %926 = vmatmul.f32.gmra.mxu2 %v2123_v21  ;;  %v1105_v21 = vpop.xlane.xlu0 %1104  ;;  %v2216_v5 = vpop.f32.mrf.mxu2 }
 0x19e   : > { %v1121_v31 = vadd.f32 %v1105_v21, %v1057_v7 }
 0x1a0   : > { %1138 = vst.msk [vmem:[#allocation4 + $0x78] sm:$0xff] %vm375_vm1, %v1121_v31 }
 0x1a2   : > { %985 = vmatmul.f32.gmra.mxu3 %v2069_v9  ;;  %v1170_v9 = vld [vmem:[#allocation4 + $0x60] sm:$0xff] }
 0x1a3   : > { %1237 = vperm.xlu0 %1593, %v1170_v9  }
 0x1a5   : > { %929 = vmatmul.f32.gmra.mxu2 %v2079_v34  ;;  %v1168_v34 = vld [vmem:[#allocation4 + $0x50] sm:$0xff]  ;;  %v2223_v36 = vpop.f32.mrf.mxu2 }
 0x1a6   : > { %1227 = vperm.xlu2 %1592, %v1168_v34   ;;  %v2387_v34 = vld [vmem:[#allocation13_spill] sm:$0xff] }
 0x1a7   : > { %v1173_v32 = vld [vmem:[#allocation4 + $0x78] sm:$0xff] }
 0x1aa   : > { %988 = vmatmul.f32.gmra.mxu3 %v2085_v39  ;;  %v1171_v39 = vld [vmem:[#allocation4 + $0x68] sm:$0xff] }
 0x1ab   : > { %1252 = vperm.xlu0 %1593, %v1173_v32  }
 0x1ad   : > { %932 = vmatmul.f32.gmra.mxu2 %v2116_v16  ;;  %v2227_v17 = vpop.f32.mrf.mxu2  ;;  %v2380_v16 = vld [vmem:[#allocation20_spill] sm:$0xff] }
 0x1ae   : > { %1242 = vperm.xlu2 %1592, %v1171_v39  }
 0x1b2   : > { %991 = vmatmul.f32.gmra.mxu3 %v2125_v22 }
 0x1b5   : > { %935 = vmatmul.f32.gmra.mxu2 %v2137_v1  ;;  %v2232_v22 = vpop.f32.mrf.mxu2  ;;  %v2381_v1 = vld [vmem:[#allocation19_spill] sm:$0xff] }
 0x1ba   : > { %994 = vmatmul.f32.gmra.mxu3 %v2081_v37 }
 0x1bd   : > { %938 = vmatmul.f32.gmra.mxu2 %v2100_v25 }
 0x1be   : > { %v1178_v25 = vpop.permute.xlu1 %1177 }
 0x1c0   : > { %v1183_v42 = vpop.permute.xlu2 %1182 }
 0x1c1   : > { %v1259_v15 = vmul.f32 %v2240_v49, %v1183_v42 }
 0x1c2   : > { %997 = vmatmul.f32.gmra.mxu3 %v2380_v16 }
 0x1c5   : > { %941 = vmatmul.f32.gmra.mxu2 %v2130_v48  ;;  %v2246_v48 = vld [vmem:[%s2360_s5] ss:$0 sm:$0xff] }
 0x1c6   : > { %v486_v12 = vadd.f32 %v2246_v48, %v2383_v55  ;;  %v489_v23 = vadd.f32 %v2246_v48, %v2384_v53  ;;  %v492_v56 = vadd.f32 %v2246_v48, %v2385_v62  ;;  %v495_v40 = vadd.f32 %v2246_v48, %v2386_v41 }
 0x1c7   : > { %v498_v32 = vadd.f32 %v2246_v48, %v2387_v34 }
 0x1ca   : > { %1000 = vmatmul.f32.gmra.mxu3 %v2139_v24  ;;  %v1258_v24 = vmul.f32 %v2240_v49, %v1178_v25  ;;  %v1188_v13 = vpop.permute.xlu0 %1187 }
 0x1cb   : > { %v1260_v26 = vmul.f32 %v2240_v49, %v1188_v13 }
 0x1d0   : > { %v897_v47 = vpop.f32.mrf.mxu2  ;;  %v1193_v3 = vpop.permute.xlu2 %1192 }
 0x1d1   : > { %v1261_v33 = vmul.f32 %v2240_v49, %v1193_v3 }
 0x1d2   : > { %1003 = vmatmul.f32.gmra.mxu3 %v2381_v1 }
 0x1d6   : > { %v1198_v52 = vpop.permute.xlu1 %1197 }
 0x1d7   : > { %v1262_v44 = vmul.f32 %v2240_v49, %v1198_v52 }
 0x1d8   : > { %v900_v37 = vpop.f32.mrf.mxu2  ;;  %v1203_v21 = vpop.permute.xlu2 %1202 }
 0x1d9   : > { %v1263_v35 = vmul.f32 %v2240_v49, %v1203_v21 }
 0x1da   : > { %1006 = vmatmul.f32.gmra.mxu3 %v2132_v18  ;;  %v2382_v18 = vld [vmem:[#allocation8_spill] sm:$0xff] }
 0x1db   : > { %v483_v11 = vadd.f32 %v2246_v48, %v2382_v18 }
 0x1e0   : > { %v903_v0 = vpop.f32.mrf.mxu2 }
 0x1e5   : > { %v962_v6 = vpop.f32.mrf.mxu3 }
 0x1e6   : > { %v963_v8 = vadd.f32 %v962_v6, %v897_v47  ;;  %v1208_v16 = vpop.permute.xlu1 %1207 }
 0x1e7   : > { %v1264_v1 = vmul.f32 %v2240_v49, %v1208_v16 }
 0x1e8   : > { %v1274_v14 = vadd.f32 %v1258_v24, %v963_v8  ;;  %v906_v58 = vpop.f32.mrf.mxu2  ;;  %v2388_v24 = vld [vmem:[#allocation14_spill] sm:$0xff] }
 0x1e9   : > { %v501_v6 = vadd.f32 %v2246_v48, %v2388_v24 }
 0x1ea   : > { %v1306_v30 = vadd.f32 %v1274_v14, %v483_v11 }
 0x1ec   : > { %1322 = vst [vmem:[%s2253_s21] sm:$0xff] %v1306_v30 }
 0x1ed   : > { %v965_v27 = vpop.f32.mrf.mxu3 }
 0x1ee   : > { %v966_v59 = vadd.f32 %v965_v27, %v900_v37 }
 0x1f0   : > { %v1275_v43 = vadd.f32 %v1259_v15, %v966_v59  ;;  %v909_v50 = vpop.f32.mrf.mxu2  ;;  %v2389_v15 = vld [vmem:[#allocation15_spill] sm:$0xff] }
 0x1f1   : > { %v504_v27 = vadd.f32 %v2246_v48, %v2389_v15 }
 0x1f2   : > { %v1307_v45 = vadd.f32 %v1275_v43, %v486_v12 }
 0x1f4   : > { %1323 = vst [vmem:[%s2253_s21 + $0x8] sm:$0xff] %v1307_v45  ;;  %v2390_v45 = vld [vmem:[#allocation16_spill] sm:$0xff] }
 0x1f5   : > { %v968_v28 = vpop.f32.mrf.mxu3  ;;  %v1213_v18 = vpop.permute.xlu2 %1212 }
 0x1f6   : > { %v969_v51 = vadd.f32 %v968_v28, %v903_v0  ;;  %v1265_v14 = vmul.f32 %v2240_v49, %v1213_v18 }
 0x1f7   : > { %v1218_v55 = vpop.permute.xlu1 %1217 }
 0x1f8   : > { %v1276_v2 = vadd.f32 %v1260_v26, %v969_v51  ;;  %v912_v57 = vpop.f32.mrf.mxu2  ;;  %v1266_v43 = vmul.f32 %v2240_v49, %v1218_v55  ;;  %v507_v26 = vadd.f32 %v2246_v48, %v2390_v45 }
 0x1fa   : > { %v1308_v4 = vadd.f32 %v1276_v2, %v489_v23 }
 0x1fc   : > { %1324 = vst [vmem:[%s2253_s21 + $0x10] sm:$0xff] %v1308_v4  ;;  %v2391_v4 = vld [vmem:[#allocation17_spill] sm:$0xff] }
 0x1fd   : > { %v971_v60 = vpop.f32.mrf.mxu3 }
 0x1fe   : > { %v972_v63 = vadd.f32 %v971_v60, %v906_v58 }
 0x1ff   : > { %v1233_v41 = vpop.permute.xlu1 %1232 }
 0x200   : > { %v1277_v46 = vadd.f32 %v1261_v33, %v972_v63  ;;  %v915_v54 = vpop.f32.mrf.mxu2  ;;  %v510_v33 = vadd.f32 %v2246_v48, %v2391_v4  ;;  %v1228_v62 = vpop.permute.xlu2 %1227  ;;  %v1269_v21 = vmul.f32 %v2240_v49, %v1233_v41 }
 0x202   : > { %v1309_v61 = vadd.f32 %v1277_v46, %v492_v56  ;;  %v1268_v46 = vmul.f32 %v2240_v49, %v1228_v62 }
 0x204   : > { %1325 = vst [vmem:[%s2253_s21 + $0x18] sm:$0xff] %v1309_v61  ;;  %v2392_v61 = vld [vmem:[#allocation18_spill] sm:$0xff] }
 0x205   : > { %v974_v19 = vpop.f32.mrf.mxu3  ;;  %v1223_v51 = vpop.permute.xlu0 %1222 }
 0x206   : > { %v975_v10 = vadd.f32 %v974_v19, %v909_v50  ;;  %v1267_v2 = vmul.f32 %v2240_v49, %v1223_v51 }
 0x208   : > { %v1278_v7 = vadd.f32 %v1262_v44, %v975_v10  ;;  %v918_v9 = vpop.f32.mrf.mxu2  ;;  %v513_v44 = vadd.f32 %v2246_v48, %v2392_v61 }
 0x20a   : > { %v1310_v31 = vadd.f32 %v1278_v7, %v495_v40 }
 0x20c   : > { %1326 = vst [vmem:[%s2253_s21 + $0x20] sm:$0xff] %v1310_v31 }
 0x20d   : > { %v977_v29 = vpop.f32.mrf.mxu3 }
 0x20e   : > { %v978_v20 = vadd.f32 %v977_v29, %v912_v57 }
 0x210   : > { %v1279_v39 = vadd.f32 %v1263_v35, %v978_v20  ;;  %v921_v25 = vpop.f32.mrf.mxu2 }
 0x212   : > { %v1311_v47 = vadd.f32 %v1279_v39, %v498_v32 }
 0x214   : > { %1327 = vst [vmem:[%s2253_s21 + $0x28] sm:$0xff] %v1311_v47  ;;  %v519_v47 = vadd.f32 %v2246_v48, %v2216_v5 }
 0x215   : > { %v980_v37 = vpop.f32.mrf.mxu3  ;;  %v1238_v20 = vpop.permute.xlu0 %1237 }
 0x216   : > { %v981_v0 = vadd.f32 %v980_v37, %v915_v54  ;;  %v1270_v34 = vmul.f32 %v2240_v49, %v1238_v20 }
 0x218   : > { %v1280_v8 = vadd.f32 %v1264_v1, %v981_v0  ;;  %v924_v30 = vpop.f32.mrf.mxu2 }
 0x21a   : > { %v1312_v11 = vadd.f32 %v1280_v8, %v501_v6  ;;  %v522_v6 = vadd.f32 %v2246_v48, %v2223_v36 }
 0x21c   : > { %1328 = vst [vmem:[%s2253_s21 + $0x30] sm:$0xff] %v1312_v11 }
 0x21d   : > { %v983_v42 = vpop.f32.mrf.mxu3  ;;  %v1253_v36 = vpop.permute.xlu0 %1252 }
 0x21e   : > { %v984_v58 = vadd.f32 %v983_v42, %v918_v9  ;;  %v516_v9 = vadd.f32 %v2246_v48, %v2210_v38 }
 0x220   : > { %v1281_v59 = vadd.f32 %v1265_v14, %v984_v58  ;;  %v927_v53 = vpop.f32.mrf.mxu2  ;;  %v1248_v14 = vpop.permute.xlu1 %1247 }
 0x221   : > { %v1272_v42 = vmul.f32 %v2240_v49, %v1248_v14 }
 0x222   : > { %v1313_v12 = vadd.f32 %v1281_v59, %v504_v27 }
 0x224   : > { %1329 = vst [vmem:[%s2253_s21 + $0x38] sm:$0xff] %v1313_v12  ;;  %v1273_v12 = vmul.f32 %v2240_v49, %v1253_v36 }
 0x225   : > { %v986_v13 = vpop.f32.mrf.mxu3 }
 0x226   : > { %v987_v50 = vadd.f32 %v986_v13, %v921_v25  ;;  %v1243_v25 = vpop.permute.xlu2 %1242 }
 0x227   : > { %v1271_v38 = vmul.f32 %v2240_v49, %v1243_v25 }
 0x228   : > { %v1282_v28 = vadd.f32 %v1266_v43, %v987_v50  ;;  %v930_v56 = vpop.f32.mrf.mxu2 }
 0x22a   : > { %v1314_v23 = vadd.f32 %v1282_v28, %v507_v26 }
 0x22c   : > { %1330 = vst [vmem:[%s2253_s21 + $0x40] sm:$0xff] %v1314_v23 }
 0x22d   : > { %v989_v3 = vpop.f32.mrf.mxu3 }
 0x22e   : > { %v990_v57 = vadd.f32 %v989_v3, %v924_v30  ;;  %v525_v30 = vadd.f32 %v2246_v48, %v2227_v17  ;;  %v528_v17 = vadd.f32 %v2246_v48, %v2232_v22 }
 0x230   : > { %v1283_v60 = vadd.f32 %v1267_v2, %v990_v57  ;;  %v933_v7 = vpop.f32.mrf.mxu2 }
 0x232   : > { %v1315_v63 = vadd.f32 %v1283_v60, %v510_v33 }
 0x234   : > { %1331 = vst [vmem:[%s2253_s21 + $0x48] sm:$0xff] %v1315_v63 }
 0x235   : > { %v992_v52 = vpop.f32.mrf.mxu3 }
 0x236   : > { %v993_v54 = vadd.f32 %v992_v52, %v927_v53 }
 0x238   : > { %v1284_v19 = vadd.f32 %v1268_v46, %v993_v54  ;;  %v936_v16 = vpop.f32.mrf.mxu2 }
 0x23a   : > { %v1316_v10 = vadd.f32 %v1284_v19, %v513_v44 }
 0x23c   : > { %1332 = vst [vmem:[%s2253_s21 + $0x50] sm:$0xff] %v1316_v10 }
 0x23d   : > { %v995_v40 = vpop.f32.mrf.mxu3 }
 0x23e   : > { %v996_v31 = vadd.f32 %v995_v40, %v930_v56 }
 0x240   : > { %v1285_v35 = vadd.f32 %v1269_v21, %v996_v31  ;;  %v939_v18 = vpop.f32.mrf.mxu2 }
 0x242   : > { %v1317_v29 = vadd.f32 %v1285_v35, %v516_v9 }
 0x244   : > { %1333 = vst [vmem:[%s2253_s21 + $0x58] sm:$0xff] %v1317_v29 }
 0x245   : > { %v998_v32 = vpop.f32.mrf.mxu3 }
 0x246   : > { %v999_v39 = vadd.f32 %v998_v32, %v933_v7 }
 0x248   : > { %v1286_v1 = vadd.f32 %v1270_v34, %v999_v39  ;;  %v942_v59 = vpop.f32.mrf.mxu2 }
 0x24a   : > { %v1318_v37 = vadd.f32 %v1286_v1, %v519_v47 }
 0x24c   : > { %1334 = vst [vmem:[%s2253_s21 + $0x60] sm:$0xff] %v1318_v37 }
 0x24d   : > { %v1001_v0 = vpop.f32.mrf.mxu3 }
 0x24e   : > { %v1002_v24 = vadd.f32 %v1001_v0, %v936_v16 }
 0x250   : > { %v1287_v8 = vadd.f32 %v1271_v38, %v1002_v24 }
 0x252   : > { %v1319_v11 = vadd.f32 %v1287_v8, %v522_v6 }
 0x254   : > { %1335 = vst [vmem:[%s2253_s21 + $0x68] sm:$0xff] %v1319_v11 }
 0x255   : > { %v1004_v5 = vpop.f32.mrf.mxu3 }
 0x256   : > { %v1005_v58 = vadd.f32 %v1004_v5, %v939_v18 }
 0x258   : > { %v1288_v15 = vadd.f32 %v1272_v42, %v1005_v58 }
 0x25a   : > { %v1320_v27 = vadd.f32 %v1288_v15, %v525_v30 }
 0x25c   : > { %1336 = vst [vmem:[%s2253_s21 + $0x70] sm:$0xff] %v1320_v27 }
 0x25d   : > { %v1007_v55 = vpop.f32.mrf.mxu3 }
 0x25e   : > { %v1008_v43 = vadd.f32 %v1007_v55, %v942_v59 }
 0x260   : > { %v1289_v13 = vadd.f32 %v1273_v12, %v1008_v43 }
 0x262   : > { %v1321_v50 = vadd.f32 %v1289_v13, %v528_v17 }
 0x264   : > { %1337 = vst [vmem:[%s2253_s21 + $0x78] sm:$0xff] %v1321_v50 }
 0x265   : > { %1623 = shalt.err (!%p1620_p6)
}
 0x266   : > { %s1678_s20 = smov 128   ;;  %s1679_s21 = smov 8  }
 0x267   : > { %1532 = dma.vmem_to_hbm [thread:$0]  (%p1760_p4), %s1352_s17, 2048, %s1354_s18, %s1339_s27, %s1678_s20, %s1678_s20, %s1679_s21  }
 0x268 PF: > { %p1538_p7 = scmp.ge.s32.totalorder %s1674_s29, 2  ;;  %s1368_s15 = sand.u32 1, %s1654_s24  }
 0x269   : > { %s1369_s16 = scalar_lea.sflag [#allocation6], %s1368_s15 }
 0x26a   : > { %p1535_p9 = pnand %p1538_p7, %p1767_p8 }
 0x26c   : > { %p1536_p10 = pneg %p1535_p9 }
 0x26e   : > { %1649 = dma.done.wait (%p1536_p10), %s1369_s16, 2048  }
 0x26f   : > { %1651 = vsyncadd (%p1536_p10), %s1369_s16, 4294965248  ;;  %s20_s29 = sadd.s32 1, %s1674_s29   ;;  %s2393_s24 = smov %s1658_s25 }
 0x270   : > { %p17_p11 = scmp.ge.s32.totalorder %s20_s29, 4   ;;  %s2394_s25 = smov %s1662_s26 }
 0x271   : > { %s2395_s26 = smov %s1773_s14  ;;  %s2396_s27 = smov %s1670_s28 }
 0x272   : > { %s2397_s28 = smov %s2399_s9  ;;  %19 = sbr.rel (!%p17_p11) target bundleno = 4 (0x4), region = 97 }
 0x277   :  { %1375 = vsyncpa [#allocation6], 1 }
 0x278   :  { %1377 = vsyncpa [#allocation6 + $0x1], 1 }

</bundles_post_ra>
